<compile_context>
chip_gen: v6e
topology: v6e:2x2x1
jax: 0.10.0
libtpu: 0.0.40
codegen_flags: <defaults>
</compile_context>

<pallas_src>
import functools

import jax
import jax.numpy as jnp
from jax.experimental import pallas as pl
from jax.experimental.pallas import tpu as pltpu


def _attention_mil_mlp_kernel(
    x_ref,      # (TB, N, D)
    vuw_ref,    # (D, 2H)   -- [V.weight.T | U.weight.T] fused
    w_ref,      # (1, 1, H) -- attention vector w
    w1_ref,     # (D, H)    -- classifier[0].weight.T
    b1_ref,     # (1, H)
    w2_ref,     # (H, O)    -- classifier[2].weight.T
    b2_ref,     # (1, O)
    out_ref,    # (TB, O)
    attn_ref,   # (TB, 1, N)  lane-dense attention output block
    bag_ref,    # VMEM scratch (TB, D)
):
    TB, N, D = x_ref.shape
    H = w_ref.shape[-1]

    x3 = x_ref[...]                               # (TB, N, D)
    x2 = x3.reshape(TB * N, D)                    # fold all bags into MXU rows

    # Fused V/U projection: a single (TB*N, D) @ (D, 2H) matmul.
    vu = jnp.dot(x2, vuw_ref[...], preferred_element_type=jnp.float32)  # (TB*N, 2H)
    gated = jnp.tanh(vu[:, :H]) * jax.nn.sigmoid(vu[:, H:])             # (TB*N, H)
    gated3 = gated.reshape(TB, N, H)                                    # (TB, N, H)

    # Attention logits with N on the lane axis: (TB,1,H) x (TB,N,H) -> (TB,1,N).
    w_b = jnp.broadcast_to(w_ref[...], (TB, 1, H))
    logits = jnp.einsum("bqh,bnh->bqn", w_b, gated3,
                        preferred_element_type=jnp.float32)             # (TB, 1, N)

    # Numerically-stable softmax over instances (last axis, lane reduce).
    # Exact reciprocal: it only touches TB scalars, so approx buys nothing.
    m = jnp.max(logits, axis=-1, keepdims=True)                         # (TB, 1, 1)
    e = jnp.exp(logits - m)                                             # (TB, 1, N)
    denom = jnp.sum(e, axis=-1, keepdims=True)                          # (TB, 1, 1)
    attn = e * pl.reciprocal(denom, approx=False)                       # (TB, 1, N)
    attn_ref[...] = attn.astype(attn_ref.dtype)                         # lane-dense store

    # Bag representation per bag: attn @ x -> (TB, 1, D).
    bag_q = jnp.einsum("bqn,bnd->bqd", attn, x3,
                       preferred_element_type=jnp.float32)

    # Collapse (TB, 1, D) -> (TB, D) through VMEM scratch (TB cheap ref stores)
    # so the classifier runs as dense M=TB matmuls.
    for b in range(TB):
        bag_ref[pl.ds(b, 1), :] = bag_q[b]
    bag = bag_ref[...]                                                  # (TB, D)

    # MLP classifier: Linear -> ReLU -> Linear.
    h = jnp.dot(bag, w1_ref[...], preferred_element_type=jnp.float32) + b1_ref[...]
    h = jnp.maximum(h, 0.0)                                             # (TB, H)
    out = jnp.dot(h, w2_ref[...], preferred_element_type=jnp.float32) + b2_ref[...]
    out_ref[...] = out.astype(out_ref.dtype)                            # (TB, O)


def _pick_block_b(B, N, D, requested):
    """Largest TB (multiple of 8) whose double-buffered x block fits ~16 MiB."""
    bytes_per_bag = max(1, N * D * 4)
    vmem_budget = 16 * 1024 * 1024          # leave headroom under the scoped limit
    max_tb = max(8, ((vmem_budget // (2 * bytes_per_bag)) // 8) * 8)
    tb = requested if requested is not None else 8
    tb = min(tb, max_tb)
    tb = max(8, (tb // 8) * 8)
    return tb


@functools.partial(jax.jit, static_argnames=("block_b",))
def attention_mil_mlp(x, params, *, block_b=8):
    """x: (B, N, D) float32. Returns (output (B, O), attn_weights (B, N))."""
    B, N, D = x.shape
    vw, uw, w, w1, b1, w2, b2 = params
    H = vw.shape[1]
    O = w2.shape[1]

    # Host-side glue: fuse V/U into one (D, 2H) projection; w as (1, 1, H).
    vuw = jnp.concatenate([vw, uw], axis=1)
    w3 = w.reshape(1, 1, H)

    # TB bags per grid step, sized against VMEM (double-buffered x block).
    TB = _pick_block_b(B, N, D, block_b)
    B_pad = ((B + TB - 1) // TB) * TB
    if B_pad != B:
        x = jnp.pad(x, ((0, B_pad - B), (0, 0), (0, 0)))
    grid = (B_pad // TB,)

    flops = (2 * B_pad * N * D * (2 * H)      # fused V/U projection
             + 2 * B_pad * N * H              # attention logits
             + 2 * B_pad * N * D              # bag aggregation
             + 2 * B_pad * D * H              # classifier layer 1
             + 2 * B_pad * H * O)             # classifier layer 2
    transcendentals = B_pad * N * (2 * H + 1)
    bytes_accessed = 4 * (B_pad * N * D + vuw.size + w.size + w1.size + b1.size
                          + w2.size + b2.size + B_pad * O + B_pad * N)

    out, attn3 = pl.pallas_call(
        _attention_mil_mlp_kernel,
        out_shape=(
            jax.ShapeDtypeStruct((B_pad, O), jnp.float32),
            jax.ShapeDtypeStruct((B_pad, 1, N), jnp.float32),
        ),
        grid_spec=pltpu.PrefetchScalarGridSpec(
            num_scalar_prefetch=0,
            grid=grid,
            in_specs=[
                pl.BlockSpec((TB, N, D), lambda b: (b, 0, 0)),
                pl.BlockSpec((D, 2 * H), lambda b: (0, 0)),
                pl.BlockSpec((1, 1, H), lambda b: (0, 0, 0)),
                pl.BlockSpec((D, H), lambda b: (0, 0)),
                pl.BlockSpec((1, H), lambda b: (0, 0)),
                pl.BlockSpec((H, O), lambda b: (0, 0)),
                pl.BlockSpec((1, O), lambda b: (0, 0)),
            ],
            out_specs=[
                pl.BlockSpec((TB, O), lambda b: (b, 0)),
                pl.BlockSpec((TB, 1, N), lambda b: (b, 0, 0)),
            ],
            scratch_shapes=[pltpu.VMEM((TB, D), jnp.float32)],
        ),
        compiler_params=pltpu.CompilerParams(
            dimension_semantics=("parallel",),
        ),
        cost_estimate=pl.CostEstimate(
            flops=flops,
            transcendentals=transcendentals,
            bytes_accessed=bytes_accessed,
        ),
    )(x, vuw, w3, w1, b1, w2, b2)

    # (B_pad, 1, N) -> (B, N): layout-preserving reshape, then unpad.
    return out[:B], attn3.reshape(B_pad, N)[:B]


def _reference(x, params):
    """Pure-JAX reference mirroring the PyTorch forward."""
    vw, uw, w, w1, b1, w2, b2 = params
    vh = jnp.tanh(x @ vw)
    uh = jax.nn.sigmoid(x @ uw)
    logits = ((vh * uh) @ w)[..., 0]               # (B, N)
    attn = jax.nn.softmax(logits, axis=1)
    bag = jnp.sum(attn[..., None] * x, axis=1)     # (B, D)
    h = jnp.maximum(bag @ w1 + b1, 0.0)
    out = h @ w2 + b2
    return out, attn


def init_params(key, input_size, hidden_size, output_size):
    ks = jax.random.split(key, 7)
    scale = 0.1
    vw = scale * jax.random.normal(ks[0], (input_size, hidden_size), jnp.float32)
    uw = scale * jax.random.normal(ks[1], (input_size, hidden_size), jnp.float32)
    w = scale * jax.random.normal(ks[2], (hidden_size, 1), jnp.float32)
    w1 = scale * jax.random.normal(ks[3], (input_size, hidden_size), jnp.float32)
    b1 = scale * jax.random.normal(ks[4], (1, hidden_size), jnp.float32)
    w2 = scale * jax.random.normal(ks[5], (hidden_size, output_size), jnp.float32)
    b2 = scale * jax.random.normal(ks[6], (1, output_size), jnp.float32)
    return (vw, uw, w, w1, b1, w2, b2)


if __name__ == "__main__":
    # attention_class = "AttentionMIL" (single gated attention head)
    B, N, D, H, O = 16, 8, 16, 32, 4
    key = jax.random.PRNGKey(0)
    kx, kp = jax.random.split(key)
    x = jax.random.normal(kx, (B, N, D), jnp.float32)
    params = init_params(kp, D, H, O)

    out, attn = attention_mil_mlp(x, params)
    out = jax.block_until_ready(out)
    attn = jax.block_until_ready(attn)

    ref_out, ref_attn = _reference(x, params)
    assert out.shape == (B, O) and attn.shape == (B, N)
    assert jnp.allclose(out, ref_out, atol=1e-4, rtol=1e-4), "output mismatch"
    assert jnp.allclose(attn, ref_attn, atol=1e-4, rtol=1e-4), "attn mismatch"
    assert jnp.allclose(jnp.sum(attn, axis=1), 1.0, atol=1e-4), "softmax not normalized"

    # Ragged batch (exercises the pad-to-TB path).
    x2 = jax.random.normal(jax.random.PRNGKey(1), (3, N, D), jnp.float32)
    out2, attn2 = attention_mil_mlp(x2, params)
    out2 = jax.block_until_ready(out2)
    attn2 = jax.block_until_ready(attn2)
    ref_out2, ref_attn2 = _reference(x2, params)
    assert jnp.allclose(out2, ref_out2, atol=1e-4, rtol=1e-4), "ragged output mismatch"
    assert jnp.allclose(attn2, ref_attn2, atol=1e-4, rtol=1e-4), "ragged attn mismatch"

    print("KERNEL_OK")
</pallas_src>

<mosaic_0001>
module attributes {stable_mosaic.version = 11 : i64} {
  func.func @_attention_mil_mlp_kernel(%arg0: i32, %arg1: memref<8x8x16xf32, #tpu.memory_space<vmem>>, %arg2: memref<16x64xf32, #tpu.memory_space<vmem>>, %arg3: memref<1x1x32xf32, #tpu.memory_space<vmem>>, %arg4: memref<16x32xf32, #tpu.memory_space<vmem>>, %arg5: memref<1x32xf32, #tpu.memory_space<vmem>>, %arg6: memref<32x4xf32, #tpu.memory_space<vmem>>, %arg7: memref<1x4xf32, #tpu.memory_space<vmem>>, %arg8: memref<8x4xf32, #tpu.memory_space<vmem>>, %arg9: memref<8x1x8xf32, #tpu.memory_space<vmem>>, %arg10: memref<8x16xf32, #tpu.memory_space<vmem>>) attributes {dimension_semantics = [#tpu.dimension_semantics<parallel>], iteration_bounds = array<i64: 2>, scalar_prefetch = 0 : i64, scratch_operands = 1 : i64, tpu.core_type = #tpu.core_type<tc>, window_params = [{transform_indices = @transform_0, window_bounds = array<i64: 8, 8, 16>}, {pipeline_mode = #tpu.pipeline_mode<synchronous>, transform_indices = @transform_1, window_bounds = array<i64: 16, 64>}, {pipeline_mode = #tpu.pipeline_mode<synchronous>, transform_indices = @transform_2, window_bounds = array<i64: 1, 1, 32>}, {pipeline_mode = #tpu.pipeline_mode<synchronous>, transform_indices = @transform_3, window_bounds = array<i64: 16, 32>}, {pipeline_mode = #tpu.pipeline_mode<synchronous>, transform_indices = @transform_4, window_bounds = array<i64: 1, 32>}, {pipeline_mode = #tpu.pipeline_mode<synchronous>, transform_indices = @transform_5, window_bounds = array<i64: 32, 4>}, {pipeline_mode = #tpu.pipeline_mode<synchronous>, transform_indices = @transform_6, window_bounds = array<i64: 1, 4>}, {transform_indices = @transform_7, window_bounds = array<i64: 8, 4>}, {transform_indices = @transform_8, window_bounds = array<i64: 8, 1, 8>}]} {
    %c0 = arith.constant 0 : index
    %c0_0 = arith.constant 0 : index
    %c0_1 = arith.constant 0 : index
    %0 = vector.load %arg1[%c0, %c0_0, %c0_1] : memref<8x8x16xf32, #tpu.memory_space<vmem>>, vector<8x8x16xf32>
    %1 = vector.shape_cast %0 : vector<8x8x16xf32> to vector<64x16xf32>
    %c0_2 = arith.constant 0 : index
    %c0_3 = arith.constant 0 : index
    %2 = vector.load %arg2[%c0_2, %c0_3] : memref<16x64xf32, #tpu.memory_space<vmem>>, vector<16x64xf32>
    %cst = arith.constant dense<0.000000e+00> : vector<64x64xf32>
    %3 = tpu.matmul %1, %2, %cst {dimension_numbers = #tpu.dot_dimension_numbers<[1], [0], [0], [1], [0, 0, 1, 1], [], []>} : vector<64x16xf32>, vector<16x64xf32>, vector<64x64xf32> -> vector<64x64xf32>
    %4 = vector.extract_strided_slice %3 {offsets = [0, 0], sizes = [64, 32], strides = [1, 1]} : vector<64x64xf32> to vector<64x32xf32>
    %5 = math.tanh %4 : vector<64x32xf32>
    %6 = vector.extract_strided_slice %3 {offsets = [0, 32], sizes = [64, 32], strides = [1, 1]} : vector<64x64xf32> to vector<64x32xf32>
    %7 = arith.negf %6 : vector<64x32xf32>
    %8 = math.exp %7 : vector<64x32xf32>
    %cst_4 = arith.constant 1.000000e+00 : f32
    %9 = vector.broadcast %cst_4 : f32 to vector<64x32xf32>
    %10 = arith.addf %9, %8 : vector<64x32xf32>
    %11 = arith.divf %9, %10 : vector<64x32xf32>
    %12 = arith.mulf %5, %11 : vector<64x32xf32>
    %13 = vector.shape_cast %12 : vector<64x32xf32> to vector<8x8x32xf32>
    %c0_5 = arith.constant 0 : index
    %c0_6 = arith.constant 0 : index
    %c0_7 = arith.constant 0 : index
    %14 = vector.load %arg3[%c0_5, %c0_6, %c0_7] : memref<1x1x32xf32, #tpu.memory_space<vmem>>, vector<1x1x32xf32>
    %15 = vector.shape_cast %14 : vector<1x1x32xf32> to vector<1x1x32xf32>
    %16 = vector.broadcast %15 : vector<1x1x32xf32> to vector<8x1x32xf32>
    "tpu.trace_start"() <{level = 10 : i32, message = "bqh,bnh->bqn"}> : () -> ()
    %cst_8 = arith.constant dense<0.000000e+00> : vector<8x1x8xf32>
    %17 = tpu.matmul %16, %13, %cst_8 {dimension_numbers = #tpu.dot_dimension_numbers<[2], [2], [1], [1], [0, 0, 0, 1, 1, 1], [0], [0]>} : vector<8x1x32xf32>, vector<8x8x32xf32>, vector<8x1x8xf32> -> vector<8x1x8xf32>
    "tpu.trace_stop"() : () -> ()
    %cst_9 = arith.constant dense<0xFF800000> : vector<8x1xf32>
    %18 = vector.multi_reduction <maximumf>, %17, %cst_9 [2] : vector<8x1x8xf32> to vector<8x1xf32>
    %19 = vector.shape_cast %18 : vector<8x1xf32> to vector<8x1x1xf32>
    %20 = vector.broadcast %19 : vector<8x1x1xf32> to vector<8x1x8xf32>
    %21 = arith.subf %17, %20 : vector<8x1x8xf32>
    %22 = math.exp %21 : vector<8x1x8xf32>
    %cst_10 = arith.constant dense<0.000000e+00> : vector<8x1xf32>
    %23 = vector.multi_reduction <add>, %22, %cst_10 [2] : vector<8x1x8xf32> to vector<8x1xf32>
    %24 = vector.shape_cast %23 : vector<8x1xf32> to vector<8x1x1xf32>
    %25 = tpu.reciprocal %24 : vector<8x1x1xf32> -> vector<8x1x1xf32>
    %26 = vector.broadcast %25 : vector<8x1x1xf32> to vector<8x1x8xf32>
    %27 = arith.mulf %22, %26 : vector<8x1x8xf32>
    %c0_11 = arith.constant 0 : index
    %c0_12 = arith.constant 0 : index
    %c0_13 = arith.constant 0 : index
    %28 = vector.load %arg9[%c0_11, %c0_12, %c0_13] : memref<8x1x8xf32, #tpu.memory_space<vmem>>, vector<8x1x8xf32>
    tpu.vector_store %arg9[%c0_11, %c0_12, %c0_13], %27 {strides = array<i32>} : memref<8x1x8xf32, #tpu.memory_space<vmem>>, vector<8x1x8xf32>,
    "tpu.trace_start"() <{level = 10 : i32, message = "bqn,bnd->bqd"}> : () -> ()
    %cst_14 = arith.constant dense<0.000000e+00> : vector<8x1x16xf32>
    %29 = tpu.matmul %27, %0, %cst_14 {dimension_numbers = #tpu.dot_dimension_numbers<[2], [1], [1], [2], [0, 0, 0, 1, 1, 2], [0], [0]>} : vector<8x1x8xf32>, vector<8x8x16xf32>, vector<8x1x16xf32> -> vector<8x1x16xf32>
    "tpu.trace_stop"() : () -> ()
    %30 = vector.extract_strided_slice %29 {offsets = [0, 0, 0], sizes = [1, 1, 16], strides = [1, 1, 1]} : vector<8x1x16xf32> to vector<1x1x16xf32>
    %31 = vector.shape_cast %30 : vector<1x1x16xf32> to vector<1x16xf32>
    %c0_15 = arith.constant 0 : index
    %c0_16 = arith.constant 0 : index
    %32 = vector.load %arg10[%c0_15, %c0_16] : memref<8x16xf32, #tpu.memory_space<vmem>>, vector<1x16xf32>
    tpu.vector_store %arg10[%c0_15, %c0_16], %31 {strides = array<i32>} : memref<8x16xf32, #tpu.memory_space<vmem>>, vector<1x16xf32>,
    %33 = vector.extract_strided_slice %29 {offsets = [1, 0, 0], sizes = [1, 1, 16], strides = [1, 1, 1]} : vector<8x1x16xf32> to vector<1x1x16xf32>
    %34 = vector.shape_cast %33 : vector<1x1x16xf32> to vector<1x16xf32>
    %c1 = arith.constant 1 : index
    %c0_17 = arith.constant 0 : index
    %35 = vector.load %arg10[%c1, %c0_17] : memref<8x16xf32, #tpu.memory_space<vmem>>, vector<1x16xf32>
    tpu.vector_store %arg10[%c1, %c0_17], %34 {strides = array<i32>} : memref<8x16xf32, #tpu.memory_space<vmem>>, vector<1x16xf32>,
    %36 = vector.extract_strided_slice %29 {offsets = [2, 0, 0], sizes = [1, 1, 16], strides = [1, 1, 1]} : vector<8x1x16xf32> to vector<1x1x16xf32>
    %37 = vector.shape_cast %36 : vector<1x1x16xf32> to vector<1x16xf32>
    %c2 = arith.constant 2 : index
    %c0_18 = arith.constant 0 : index
    %38 = vector.load %arg10[%c2, %c0_18] : memref<8x16xf32, #tpu.memory_space<vmem>>, vector<1x16xf32>
    tpu.vector_store %arg10[%c2, %c0_18], %37 {strides = array<i32>} : memref<8x16xf32, #tpu.memory_space<vmem>>, vector<1x16xf32>,
    %39 = vector.extract_strided_slice %29 {offsets = [3, 0, 0], sizes = [1, 1, 16], strides = [1, 1, 1]} : vector<8x1x16xf32> to vector<1x1x16xf32>
    %40 = vector.shape_cast %39 : vector<1x1x16xf32> to vector<1x16xf32>
    %c3 = arith.constant 3 : index
    %c0_19 = arith.constant 0 : index
    %41 = vector.load %arg10[%c3, %c0_19] : memref<8x16xf32, #tpu.memory_space<vmem>>, vector<1x16xf32>
    tpu.vector_store %arg10[%c3, %c0_19], %40 {strides = array<i32>} : memref<8x16xf32, #tpu.memory_space<vmem>>, vector<1x16xf32>,
    %42 = vector.extract_strided_slice %29 {offsets = [4, 0, 0], sizes = [1, 1, 16], strides = [1, 1, 1]} : vector<8x1x16xf32> to vector<1x1x16xf32>
    %43 = vector.shape_cast %42 : vector<1x1x16xf32> to vector<1x16xf32>
    %c4 = arith.constant 4 : index
    %c0_20 = arith.constant 0 : index
    %44 = vector.load %arg10[%c4, %c0_20] : memref<8x16xf32, #tpu.memory_space<vmem>>, vector<1x16xf32>
    tpu.vector_store %arg10[%c4, %c0_20], %43 {strides = array<i32>} : memref<8x16xf32, #tpu.memory_space<vmem>>, vector<1x16xf32>,
    %45 = vector.extract_strided_slice %29 {offsets = [5, 0, 0], sizes = [1, 1, 16], strides = [1, 1, 1]} : vector<8x1x16xf32> to vector<1x1x16xf32>
    %46 = vector.shape_cast %45 : vector<1x1x16xf32> to vector<1x16xf32>
    %c5 = arith.constant 5 : index
    %c0_21 = arith.constant 0 : index
    %47 = vector.load %arg10[%c5, %c0_21] : memref<8x16xf32, #tpu.memory_space<vmem>>, vector<1x16xf32>
    tpu.vector_store %arg10[%c5, %c0_21], %46 {strides = array<i32>} : memref<8x16xf32, #tpu.memory_space<vmem>>, vector<1x16xf32>,
    %48 = vector.extract_strided_slice %29 {offsets = [6, 0, 0], sizes = [1, 1, 16], strides = [1, 1, 1]} : vector<8x1x16xf32> to vector<1x1x16xf32>
    %49 = vector.shape_cast %48 : vector<1x1x16xf32> to vector<1x16xf32>
    %c6 = arith.constant 6 : index
    %c0_22 = arith.constant 0 : index
    %50 = vector.load %arg10[%c6, %c0_22] : memref<8x16xf32, #tpu.memory_space<vmem>>, vector<1x16xf32>
    tpu.vector_store %arg10[%c6, %c0_22], %49 {strides = array<i32>} : memref<8x16xf32, #tpu.memory_space<vmem>>, vector<1x16xf32>,
    %51 = vector.extract_strided_slice %29 {offsets = [7, 0, 0], sizes = [1, 1, 16], strides = [1, 1, 1]} : vector<8x1x16xf32> to vector<1x1x16xf32>
    %52 = vector.shape_cast %51 : vector<1x1x16xf32> to vector<1x16xf32>
    %c7 = arith.constant 7 : index
    %c0_23 = arith.constant 0 : index
    %53 = vector.load %arg10[%c7, %c0_23] : memref<8x16xf32, #tpu.memory_space<vmem>>, vector<1x16xf32>
    tpu.vector_store %arg10[%c7, %c0_23], %52 {strides = array<i32>} : memref<8x16xf32, #tpu.memory_space<vmem>>, vector<1x16xf32>,
    %c0_24 = arith.constant 0 : index
    %c0_25 = arith.constant 0 : index
    %54 = vector.load %arg10[%c0_24, %c0_25] : memref<8x16xf32, #tpu.memory_space<vmem>>, vector<8x16xf32>
    %c0_26 = arith.constant 0 : index
    %c0_27 = arith.constant 0 : index
    %55 = vector.load %arg4[%c0_26, %c0_27] : memref<16x32xf32, #tpu.memory_space<vmem>>, vector<16x32xf32>
    %cst_28 = arith.constant dense<0.000000e+00> : vector<8x32xf32>
    %56 = tpu.matmul %54, %55, %cst_28 {dimension_numbers = #tpu.dot_dimension_numbers<[1], [0], [0], [1], [0, 0, 1, 1], [], []>} : vector<8x16xf32>, vector<16x32xf32>, vector<8x32xf32> -> vector<8x32xf32>
    %c0_29 = arith.constant 0 : index
    %c0_30 = arith.constant 0 : index
    %57 = vector.load %arg5[%c0_29, %c0_30] : memref<1x32xf32, #tpu.memory_space<vmem>>, vector<1x32xf32>
    %58 = vector.broadcast %57 : vector<1x32xf32> to vector<8x32xf32>
    %59 = arith.addf %56, %58 : vector<8x32xf32>
    %cst_31 = arith.constant 0.000000e+00 : f32
    %60 = vector.broadcast %cst_31 : f32 to vector<8x32xf32>
    %61 = arith.maximumf %59, %60 : vector<8x32xf32>
    %c0_32 = arith.constant 0 : index
    %c0_33 = arith.constant 0 : index
    %62 = vector.load %arg6[%c0_32, %c0_33] : memref<32x4xf32, #tpu.memory_space<vmem>>, vector<32x4xf32>
    %cst_34 = arith.constant dense<0.000000e+00> : vector<8x4xf32>
    %63 = tpu.matmul %61, %62, %cst_34 {dimension_numbers = #tpu.dot_dimension_numbers<[1], [0], [0], [1], [0, 0, 1, 1], [], []>} : vector<8x32xf32>, vector<32x4xf32>, vector<8x4xf32> -> vector<8x4xf32>
    %c0_35 = arith.constant 0 : index
    %c0_36 = arith.constant 0 : index
    %64 = vector.load %arg7[%c0_35, %c0_36] : memref<1x4xf32, #tpu.memory_space<vmem>>, vector<1x4xf32>
    %65 = vector.broadcast %64 : vector<1x4xf32> to vector<8x4xf32>
    %66 = arith.addf %63, %65 : vector<8x4xf32>
    %c0_37 = arith.constant 0 : index
    %c0_38 = arith.constant 0 : index
    %67 = vector.load %arg8[%c0_37, %c0_38] : memref<8x4xf32, #tpu.memory_space<vmem>>, vector<8x4xf32>
    tpu.vector_store %arg8[%c0_37, %c0_38], %66 {strides = array<i32>} : memref<8x4xf32, #tpu.memory_space<vmem>>, vector<8x4xf32>,
    return
  }
  func.func @transform_0(%arg0: i32) -> (i32, i32, i32) {
    %c0_i32 = arith.constant 0 : i32
    %c0_i32_0 = arith.constant 0 : i32
    %c0_i32_1 = arith.constant 0 : i32
    return %arg0, %c0_i32, %c0_i32_0 : i32, i32, i32
  }
  func.func @transform_1(%arg0: i32) -> (i32, i32) {
    %c0_i32 = arith.constant 0 : i32
    %c0_i32_0 = arith.constant 0 : i32
    %c0_i32_1 = arith.constant 0 : i32
    return %c0_i32, %c0_i32_0 : i32, i32
  }
  func.func @transform_2(%arg0: i32) -> (i32, i32, i32) {
    %c0_i32 = arith.constant 0 : i32
    %c0_i32_0 = arith.constant 0 : i32
    %c0_i32_1 = arith.constant 0 : i32
    %c0_i32_2 = arith.constant 0 : i32
    return %c0_i32, %c0_i32_0, %c0_i32_1 : i32, i32, i32
  }
  func.func @transform_3(%arg0: i32) -> (i32, i32) {
    %c0_i32 = arith.constant 0 : i32
    %c0_i32_0 = arith.constant 0 : i32
    %c0_i32_1 = arith.constant 0 : i32
    return %c0_i32, %c0_i32_0 : i32, i32
  }
  func.func @transform_4(%arg0: i32) -> (i32, i32) {
    %c0_i32 = arith.constant 0 : i32
    %c0_i32_0 = arith.constant 0 : i32
    %c0_i32_1 = arith.constant 0 : i32
    return %c0_i32, %c0_i32_0 : i32, i32
  }
  func.func @transform_5(%arg0: i32) -> (i32, i32) {
    %c0_i32 = arith.constant 0 : i32
    %c0_i32_0 = arith.constant 0 : i32
    %c0_i32_1 = arith.constant 0 : i32
    return %c0_i32, %c0_i32_0 : i32, i32
  }
  func.func @transform_6(%arg0: i32) -> (i32, i32) {
    %c0_i32 = arith.constant 0 : i32
    %c0_i32_0 = arith.constant 0 : i32
    %c0_i32_1 = arith.constant 0 : i32
    return %c0_i32, %c0_i32_0 : i32, i32
  }
  func.func @transform_7(%arg0: i32) -> (i32, i32) {
    %c0_i32 = arith.constant 0 : i32
    %c0_i32_0 = arith.constant 0 : i32
    return %arg0, %c0_i32 : i32, i32
  }
  func.func @transform_8(%arg0: i32) -> (i32, i32, i32) {
    %c0_i32 = arith.constant 0 : i32
    %c0_i32_0 = arith.constant 0 : i32
    %c0_i32_1 = arith.constant 0 : i32
    return %arg0, %c0_i32, %c0_i32_0 : i32, i32, i32
  }
}

</mosaic_0001>

<bundles_post_ra>
// kernel: attention_mil_mlp.1
= control target key start
LH: loop header
LB: loop body
LE: loop exit
PB: predicated region body
PF: predicated region fallthrough
CT: control target
= control target key end

     0   :  { %14 = vsyncpa [#allocation4], 0  ;;  %s2916_s0 = inlined_call_operand.hbm [shape: f32[16,8,16], index: 0, kind: input, shape index: {}]   ;;  %s2917_s1 = inlined_call_operand.vmem [shape: f32[16,64], index: 1, kind: input, shape index: {}]   ;;  %s2918_s2 = inlined_call_operand.vmem [shape: f32[1,1,32], index: 2, kind: input, shape index: {}]   ;;  %s2919_s3 = inlined_call_operand.vmem [shape: f32[16,32], index: 3, kind: input, shape index: {}]   ;;  %s2920_s4 = inlined_call_operand.vmem [shape: f32[1,32], index: 4, kind: input, shape index: {}]   ;;  %s2921_s5 = inlined_call_operand.vmem [shape: f32[32,4], index: 5, kind: input, shape index: {}]   ;;  %s2922_s6 = inlined_call_operand.vmem [shape: f32[1,4], index: 6, kind: input, shape index: {}]   ;;  %s2923_s7 = inlined_call_operand.vmem [shape: f32[16,4], index: 7, kind: output, shape index: {0}]   ;;  %s2924_s8 = inlined_call_operand.vmem [shape: f32[16,1,8], index: 8, kind: output, shape index: {1}]  }
   0x1   :  { %16 = vsyncpa [#allocation4 + $0x1], 0  ;;  %s2576_s27 = smov 0   ;;  %s2578_s28 = smov 0  }
   0x2   :  { %s2580_s29 = smov 0   ;;  %s2582_s30 = smov 0  }
   0x3 LB: > { %s2595_s9 = sadd.s32 4294967295, %s2523_s30   ;;  %s2598_s10 = sadd.s32 1, %s2523_s30   ;;  %s2523_s30 = sphi %s2582_s30, %s2933_s30   ;;  %s2519_s29 = sphi %s2580_s29, %s2932_s29   ;;  %s2515_s28 = sphi %s2578_s28, %s2931_s28   ;;  %s2511_s27 = sphi %s2576_s27, %s2930_s27  }
   0x4   : > { %s26_s11 = ssub.s32 %s2523_s30, %s2598_s10  ;;  %s29_s12 = sadd.s32 1, %s2519_s29 }
   0x5   : > { %p27_p0 = scmp.eq.s32.totalorder %s26_s11, 0  ;;  %p36_p1 = scmp.ne.s32.totalorder %s2519_s29, %s2515_s28 }
   0x6   : > { %p37_p2 = scmp.eq.s32.totalorder %s2523_s30, 0  ;;  %p42_p3 = scmp.ne.s32.totalorder %s2515_s28, %s2511_s27 }
   0x7   : > { %s2608_s13 = scalar_select %p27_p0, %s2519_s29, %s29_s12  }
   0x8   : > { %p38_p4 = por %p37_p2, %p36_p1  ;;  %p43_p5 = scmp.eq.s32.totalorder %s2595_s9, 0 }
   0x9   : > { %p2343_p6 = scmp.lt.s32.totalorder %s2523_s30, 2  ;;  %s262_s15 = sand.u32 1, %s2519_s29  }
   0xa   : > { %p2612_p7 = por %p43_p5, %p42_p3  ;;  %s2119_s16 = sshll.u32 %s262_s15, 6 }
   0xb   : > { %s2172_s17 = sshll.u32 %s2523_s30, 10  ;;  %s266_s21 = scalar_lea.vmem [#allocation3], %s2119_s16 }
   0xc   : > { %s2926_s14 = scalar_select %p2612_p7, 1, 0 }
   0xd   : > { %s2621_s20 = scalar_lea.hbm %s2916_s0, %s2172_s17  ;;  %s273_s22 = sshll.u32 %s266_s21, 4  ;;  %s2623_s22 = int_to_ptr.vmem [resolvable:$true] %s273_s22 }
   0xe   : > { %p2625_p8 = pnand %p2343_p6, %p38_p4  ;;  %s2630_s24 = scalar_lea.sflag [#allocation4], %s262_s15 }
   0xf   : > { %s2461_s25 = scalar_lea.hbm %s2621_s20, 1024  ;;  %s2466_s11 = scalar_lea.hbm %s2916_s0, 2048 }
  0x10   : > { %p2462_p10 = scmp.ne.s32.totalorder %s2621_s20, %s2461_s25  ;;  %p2463_p11 = pneg %p2625_p8 }
  0x11   : > { %p2467_p0 = scmp.lt.s32.totalorder %s2621_s20, %s2916_s0  ;;  %p2468_p1 = scmp.lt.s32.totalorder %s2466_s11, %s2461_s25 }
  0x12   : > { %p2464_p12 = pnand %p2463_p11, %p2462_p10 }
  0x13   : > { %p2469_p2 = por %p2468_p1, %p2467_p0 }
  0x14   : > { %p2465_p13 = pneg %p2464_p12 }
  0x16   : > { %p2470_p3 = pnand %p2469_p2, %p2465_p13 }
  0x18   : > { %2473 = shalt.err (!%p2470_p3)
}
  0x19   : > { %s2474_s15 = scalar_lea.vmem %s2623_s22, 1024  ;;  %s2525_s17 = smov [#allocation3]  }
  0x1a   : > { %p2475_p4 = scmp.ne.s32.totalorder %s2623_s22, %s2474_s15  ;;  %s2479_s18 = sshll.u32 %s2525_s17, 4  ;;  %s2480_s18 = int_to_ptr.vmem [resolvable:$false] %s2479_s18 }
  0x1b   : > { %s2481_s19 = scalar_lea.vmem %s2480_s18, 2048  ;;  %p2482_p10 = scmp.lt.s32.totalorder %s2623_s22, %s2480_s18 }
  0x1c   : > { %p2477_p5 = pnand %p2475_p4, %p2463_p11  ;;  %p2483_p12 = scmp.lt.s32.totalorder %s2481_s19, %s2474_s15 }
  0x1e   : > { %p2478_p6 = pneg %p2477_p5  ;;  %p2484_p9 = por %p2483_p12, %p2482_p10 }
  0x20   : > { %p2485_p7 = pnand %p2484_p9, %p2478_p6 }
  0x22   : > { %2488 = shalt.err (!%p2485_p7)
}
  0x23   : > { %s2526_s21 = smov 128   ;;  %s2527_s25 = smov 8  }
  0x24   : > { %2342 = dma.hbm_to_vmem [thread:$0]  (!%p2625_p8), %s2621_s20, 1024, %s2623_s22, %s2630_s24, %s2526_s21, %s2526_s21, %s2527_s25  }
  0x25   : > { %p281_p11 = scmp.lt.s32.totalorder %s2523_s30, 3  ;;  %p2928_p13 = scmp.ge.s32.totalorder %s2523_s30, 1 }
  0x27   : > { %p282_p0 = pnand %p2928_p13, %p281_p11 }
  0x28   : > { %s287_s26 = sand.u32 (!%p282_p0), 1, %s2515_s28   ;;  %p2929_p7 = scmp.ne.s32.totalorder (!%p282_p0), %s2926_s14, 0 }
  0x29   : > { %285 = sbr.rel (%p282_p0) target bundleno = 1518 (0x5ee), region = 48  ;;  %s2123_s27 = sshll.u32 (!%p282_p0), %s287_s26, 6 }
  0x2a   : > { %s288_s11 = scalar_lea.sflag (!%p282_p0), [#allocation4], %s287_s26  ;;  %s291_s12 = scalar_lea.vmem (!%p282_p0), [#allocation3], %s2123_s27 }
  0x2e   : > { %2506 = dma.done.wait (%p2929_p7), %s288_s11, 1024  }
  0x2f   : > { %2508 = vsyncadd (%p2929_p7), %s288_s11, 4294966272  ;;  %vm347_vm0 = vcmask 130048   ;;  %v346_v0 = vld [vmem:[%s2917_s1 + $0x8] sm:$0xff]  ;;  %v345_v1 = vld [vmem:[%s2917_s1] sm:$0xff]  ;;  %v2528_v33 = vmov 0.0   ;;  %vm2529_vm1 = vmmov 0  }
  0x30   : > { %v2665_v2 = vld [vmem:[%s291_s12] sm:$0xff]  ;;  %2223 = vmatprep.subr.mxu0 %v346_v0  ;;  %v2669_v3 = vld [vmem:[%s291_s12 + $0x8] sm:$0xff]  ;;  %v2671_v4 = vld [vmem:[%s291_s12 + $0x10] sm:$0xff]  ;;  %2239 = vmatprep.subr.mxu1 %v2528_v33  ;;  %s2530_s14 = smov 96   ;;  %vm574_vm2 = vcmask 261120   ;;  %vm1162_vm3 = vcmask 57344  }
  0x31   : > { %2227 = vmatprep.mubr.msk.f32.mxu0 %vm347_vm0, %v2665_v2  ;;  %2224 = vmatpush3.msra.mxu0 %v346_v0  ;;  %v2677_v5 = vld [vmem:[%s291_s12 + $0x18] sm:$0xff]  ;;  %v2679_v6 = vld [vmem:[%s291_s12 + $0x20] sm:$0xff]  ;;  %v2685_v7 = vld [vmem:[%s291_s12 + $0x28] sm:$0xff]  ;;  %s2125_s24 = sshll.u32 %s2595_s9, 3  ;;  %vm1259_vm4 = vcmask 64512   ;;  %vm1844_vm5 = vcmask 122880  }
  0x32   : > { %2225 = vmatprep.subr.mxu0 %v345_v1  ;;  %v2687_v8 = vld [vmem:[%s291_s12 + $0x30] sm:$0xff]  ;;  %v2693_v9 = vld [vmem:[%s291_s12 + $0x38] sm:$0xff]  ;;  %2241 = vmatprep.mubr.msk.f32.mxu1 %vm2529_vm1, %v2528_v33  ;;  %p333_p8 = scmp.lt.s32.totalorder %s2125_s24, 15  ;;  %p328_p9 = scmp.lt.s32.totalorder %s2595_s9, 1  ;;  %vm2021_vm6 = vcmask 31744  }
  0x33   : > { %2226 = vmatpush3.msra.mxu0 %v345_v1  ;;  %v573_v54 = vld [vmem:[%s2918_s2] sm:$0x1] }
  0x34   : > { %2228 = vmatmul.mubr.msk.f32.vlgmr.msra.gmra.mxu0 %vm347_vm0, %v2669_v3  ;;  %2259 = vmatprep.subr.mxu0 %v2528_v33  ;;  %s2935_s24 = smov (!%p333_p8, %s2125_s24), 15  ;;  %s2937_s9 = smov (!%p328_p9, %s2595_s9), 1 }
  0x35   : > { %2230 = vmatprep.mubr.msk.f32.mxu0 %vm347_vm0, %v2671_v4  ;;  %s2803_s19 = scalar_lea.vmem %s2924_s8, %s2935_s24  ;;  %s2124_s17 = sshll.u32 %s2937_s9, 3 }
  0x36   : > { %s331_s26 = scalar_lea.vmem %s2923_s7, %s2124_s17 }
  0x38   : > { %2231 = vmatmul.mubr.msk.f32.gmra.mxu0 %vm347_vm0, %v2677_v5 }
  0x39   : > { %2233 = vmatprep.mubr.msk.f32.mxu0 %vm347_vm0, %v2679_v6 }
  0x3c   : > { %2234 = vmatmul.mubr.msk.f32.gmra.mxu0 %vm347_vm0, %v2685_v7 }
  0x3d   : > { %2236 = vmatprep.mubr.msk.f32.mxu0 %vm347_vm0, %v2687_v8 }
  0x40   : > { %2237 = vmatmul.mubr.msk.f32.gmra.mxu0 %vm347_vm0, %v2693_v9 }
  0x41   : > { %2261 = vmatprep.mubr.msk.f32.mxu0 %vm2529_vm1, %v2528_v33 }
  0xf4   : > { %v2697_v10 = vpop.f32.mrf.mxu0 }
  0xf5   : > { %v2135_v11 = vmul.f32 -1.442695, %v2697_v10 }
  0xf6   : > { %v2700_v12 = vpop.f32.mrf.mxu0 }
  0xf7   : > { %v2134_v13 = vmul.f32 -1.442695, %v2700_v12  ;;  %2381 = vpow2.f32 %v2135_v11 }
  0xf8   : > { %v2703_v14 = vpop.f32.mrf.mxu0 }
  0xf9   : > { %2383 = vpow2.f32 %v2134_v13  ;;  %v2137_v15 = vmul.f32 -1.442695, %v2703_v14 }
  0xfa   : > { %v2706_v16 = vpop.f32.mrf.mxu0 }
  0xfb   : > { %v2136_v17 = vmul.f32 -1.442695, %v2706_v16  ;;  %2385 = vpow2.f32 %v2137_v15 }
  0xfc   : > { %v2709_v18 = vpop.f32.mrf.mxu0 }
  0xfd   : > { %2387 = vpow2.f32 %v2136_v17  ;;  %v2139_v19 = vmul.f32 -1.442695, %v2709_v18 }
  0xfe   : > { %v458_v20 = vpop.f32.mrf.mxu0 }
  0xff   : > { %2389 = vpow2.f32 %v2139_v19  ;;  %v2138_v21 = vmul.f32 -1.442695, %v458_v20 }
 0x100   : > { %v2712_v22 = vpop.f32.mrf.mxu0 }
 0x101   : > { %2391 = vpow2.f32 %v2138_v21  ;;  %v2141_v23 = vmul.f32 -1.442695, %v2712_v22 }
 0x102   : > { %v468_v24 = vpop.f32.mrf.mxu0 }
 0x103   : > { %2393 = vpow2.f32 %v2141_v23  ;;  %v2140_v25 = vmul.f32 -1.442695, %v468_v24 }
 0x104   : > { %v2382_v26 = vpop.eup %2381 }
 0x105   : > { %2395 = vpow2.f32 %v2140_v25  ;;  %v510_v29 = vadd.f32 1.0, %v2382_v26 }
 0x106   : > { %v2384_v27 = vpop.eup %2383 }
 0x107   : > { %v509_v28 = vadd.f32 1.0, %v2384_v27 }
 0x108   : > { %v2386_v30 = vpop.eup %2385 }
 0x109   : > { %2397 = vrcp.f32 %v509_v28  ;;  %v512_v35 = vadd.f32 1.0, %v2386_v30 }
 0x10a   : > { %v2388_v31 = vpop.eup %2387  ;;  %2399 = vrcp.f32 %v510_v29 }
 0x10b   : > { %v511_v32 = vadd.f32 1.0, %v2388_v31 }
 0x10c   : > { %v2390_v34 = vpop.eup %2389 }
 0x10d   : > { %2401 = vrcp.f32 %v511_v32  ;;  %v514_v37 = vadd.f32 1.0, %v2390_v34 }
 0x10e   : > { %v2392_v36 = vpop.eup %2391  ;;  %2403 = vrcp.f32 %v512_v35 }
 0x10f   : > { %v513_v38 = vadd.f32 1.0, %v2392_v36 }
 0x110   : > { %v2394_v39 = vpop.eup %2393 }
 0x111   : > { %2405 = vrcp.f32 %v513_v38  ;;  %v516_v41 = vadd.f32 1.0, %v2394_v39 }
 0x112   : > { %v2396_v40 = vpop.eup %2395  ;;  %2407 = vrcp.f32 %v514_v37 }
 0x113   : > { %v515_v42 = vadd.f32 1.0, %v2396_v40 }
 0x115   : > { %2409 = vrcp.f32 %v515_v42 }
 0x116   : > { %v2398_v43 = vpop.eup %2397  ;;  %2411 = vrcp.f32 %v516_v41 }
 0x117   : > { %541 = vrot.lane.b32.xlu0 %v2398_v43, %s2530_s14  ;;  %v2400_v44 = vpop.eup %2399  ;;  %2413 = vtanh.f32 %v2700_v12 }
 0x118   : > { %2415 = vtanh.f32 %v2697_v10 }
 0x119   : > { %2417 = vtanh.f32 %v2706_v16 }
 0x11a   : > { %v2402_v45 = vpop.eup %2401  ;;  %2419 = vtanh.f32 %v458_v20 }
 0x11b   : > { %543 = vrot.lane.b32.xlu0 %v2400_v44, %s2530_s14  ;;  %545 = vrot.lane.b32.xlu1 %v2402_v45, %s2530_s14  ;;  %v2404_v46 = vpop.eup %2403  ;;  %2421 = vtanh.f32 %v2703_v14 }
 0x11c   : > { %2423 = vtanh.f32 %v468_v24 }
 0x11d   : > { %2425 = vtanh.f32 %v2709_v18 }
 0x11e   : > { %v2406_v47 = vpop.eup %2405  ;;  %2427 = vtanh.f32 %v2712_v22 }
 0x11f   : > { %547 = vrot.lane.b32.xlu1 %v2404_v46, %s2530_s14  ;;  %549 = vrot.lane.b32.xlu0 %v2406_v47, %s2530_s14  ;;  %v2408_v48 = vpop.eup %2407 }
 0x122   : > { %v2410_v49 = vpop.eup %2409 }
 0x123   : > { %551 = vrot.lane.b32.xlu1 %v2408_v48, %s2530_s14  ;;  %553 = vrot.lane.b32.xlu0 %v2410_v49, %s2530_s14  ;;  %v2412_v50 = vpop.eup %2411 }
 0x124   : > { %v2414_v51 = vpop.eup %2413 }
 0x125   : > { %v2416_v55 = vpop.eup %2415 }
 0x126   : > { %v2418_v59 = vpop.eup %2417 }
 0x127   : > { %555 = vrot.lane.b32.xlu1 %v2412_v50, %s2530_s14  ;;  %v2420_v60 = vpop.eup %2419 }
 0x128   : > { %v2422_v1 = vpop.eup %2421 }
 0x129   : > { %v2424_v10 = vpop.eup %2423 }
 0x12a   : > { %v2426_v15 = vpop.eup %2425 }
 0x12b   : > { %v2428_v18 = vpop.eup %2427 }
 0x189   : > { %v542_v52 = vpop.permute.xlu0 %541 }
 0x18a   : > { %v565_v53 = vmul.f32 %v2414_v51, %v542_v52 }
 0x18c   : > { %2240 = vmatpush3.xpose.msk.msra.mxu1 %vm574_vm2, %v565_v53 }
 0x18d   : > { %v544_v56 = vpop.permute.xlu0 %543  ;;  %v546_v57 = vpop.permute.xlu1 %545  ;;  %2244 = vmatprep.subr.mxu1 %v2528_v33 }
 0x18e   : > { %v566_v58 = vmul.f32 %v2416_v55, %v544_v56  ;;  %v567_v63 = vmul.f32 %v2418_v59, %v546_v57 }
 0x18f   : > { %2242 = vmatmul.mubr.msk.f32.vlgmr.msra.gmra.mxu1 %vm574_vm2, %v573_v54 }
 0x190   : > { %2245 = vmatpush3.xpose.msk.msra.mxu1 %vm574_vm2, %v566_v58  ;;  %2246 = vmatprep.mubr.msk.f32.mxu1 %vm2529_vm1, %v2528_v33 }
 0x191   : > { %v548_v61 = vpop.permute.xlu1 %547  ;;  %v550_v62 = vpop.permute.xlu0 %549  ;;  %2249 = vmatprep.subr.mxu1 %v2528_v33 }
 0x192   : > { %v569_v0 = vmul.f32 %v2420_v60, %v550_v62  ;;  %v568_v13 = vmul.f32 %v2422_v1, %v548_v61 }
 0x193   : > { %2247 = vmatmul.mubr.msk.f32.vlgmr.msra.gmra.mxu1 %vm574_vm2, %v573_v54 }
 0x194   : > { %2250 = vmatpush3.xpose.msk.msra.mxu1 %vm574_vm2, %v567_v63  ;;  %2260 = vmatpush3.xpose.msk.msra.mxu0 %vm574_vm2, %v569_v0 }
 0x195   : > { %v552_v11 = vpop.permute.xlu1 %551  ;;  %v554_v12 = vpop.permute.xlu0 %553  ;;  %2251 = vmatprep.mubr.msk.f32.mxu1 %vm2529_vm1, %v2528_v33  ;;  %2254 = vmatprep.subr.mxu1 %v2528_v33 }
 0x196   : > { %v571_v14 = vmul.f32 %v2424_v10, %v554_v12  ;;  %2269 = vmatprep.subr.mxu0 %v2528_v33  ;;  %v570_v16 = vmul.f32 %v2426_v15, %v552_v11 }
 0x197   : > { %2252 = vmatmul.mubr.msk.f32.vlgmr.msra.gmra.mxu1 %vm574_vm2, %v573_v54  ;;  %2262 = vmatmul.mubr.msk.f32.vlgmr.msra.gmra.mxu0 %vm574_vm2, %v573_v54 }
 0x198   : > { %2255 = vmatpush3.xpose.msk.msra.mxu1 %vm574_vm2, %v568_v13  ;;  %2270 = vmatpush3.xpose.msk.msra.mxu0 %vm574_vm2, %v571_v14 }
 0x199   : > { %2256 = vmatprep.mubr.msk.f32.mxu1 %vm2529_vm1, %v2528_v33  ;;  %2271 = vmatprep.mubr.msk.f32.mxu0 %vm2529_vm1, %v2528_v33  ;;  %v556_v17 = vpop.permute.xlu1 %555 }
 0x19a   : > { %2264 = vmatprep.subr.mxu1 %v2528_v33  ;;  %2279 = vmatprep.subr.mxu0 %v2528_v33  ;;  %v572_v19 = vmul.f32 %v2428_v18, %v556_v17 }
 0x19b   : > { %2257 = vmatmul.mubr.msk.f32.vlgmr.msra.gmra.mxu1 %vm574_vm2, %v573_v54  ;;  %2272 = vmatmul.mubr.msk.f32.vlgmr.msra.gmra.mxu0 %vm574_vm2, %v573_v54 }
 0x19c   : > { %2265 = vmatpush3.xpose.msk.msra.mxu1 %vm574_vm2, %v570_v16  ;;  %2266 = vmatprep.mubr.msk.f32.mxu1 %vm2529_vm1, %v2528_v33 }
 0x19d   : > { %2274 = vmatprep.subr.mxu1 %v2528_v33  ;;  %2280 = vmatpush3.msra.mxu0 %v2665_v2 }
 0x19e   : > { %2281 = vmatprep.mubr.msk.f32.mxu0 %vm2529_vm1, %v2528_v33  ;;  %2289 = vmatprep.subr.mxu0 %v2528_v33 }
 0x19f   : > { %2267 = vmatmul.mubr.msk.f32.vlgmr.msra.gmra.mxu1 %vm574_vm2, %v573_v54 }
 0x1a0   : > { %2275 = vmatpush3.xpose.msk.msra.mxu1 %vm574_vm2, %v572_v19  ;;  %2276 = vmatprep.mubr.msk.f32.mxu1 %vm2529_vm1, %v2528_v33 }
 0x1a1   : > { %2284 = vmatprep.subr.mxu1 %v2528_v33 }
 0x1a3   : > { %2277 = vmatmul.mubr.msk.f32.vlgmr.msra.gmra.mxu1 %vm574_vm2, %v573_v54 }
 0x1a4   : > { %2285 = vmatpush3.msra.mxu1 %v2669_v3  ;;  %2286 = vmatprep.mubr.msk.f32.mxu1 %vm2529_vm1, %v2528_v33 }
 0x1a5   : > { %2294 = vmatprep.subr.mxu1 %v2528_v33 }
 0x24f   : > { %v647_v2 = vpop.f32.mrf.mxu1 }
 0x250   : > { %v1163_v20 = vsel %vm1162_vm3, %v647_v2, -inf }
 0x251   : > { %v2243_v21 = vpop.f32.mrf.mxu1  ;;  %1164 = vmax.xlane.f32.xlu0 %v1163_v20 }
 0x253   : > { %v720_v22 = vpop.f32.mrf.mxu1 }
 0x254   : > { %v1166_v23 = vsel %vm1162_vm3, %v720_v22, -inf }
 0x255   : > { %v2248_v24 = vpop.f32.mrf.mxu1  ;;  %1167 = vmax.xlane.f32.xlu1 %v1166_v23 }
 0x257   : > { %v793_v25 = vpop.f32.mrf.mxu1  ;;  %v939_v26 = vpop.f32.mrf.mxu0 }
 0x258   : > { %v1175_v3 = vsel %vm1162_vm3, %v939_v26, -inf  ;;  %v1169_v27 = vsel %vm1162_vm3, %v793_v25, -inf }
 0x259   : > { %v2253_v28 = vpop.f32.mrf.mxu1  ;;  %1176 = vmax.xlane.f32.xlu1 %v1175_v3  ;;  %v2263_v29 = vpop.f32.mrf.mxu0  ;;  %1170 = vmax.xlane.f32.xlu0 %v1169_v27 }
 0x25b   : > { %v866_v30 = vpop.f32.mrf.mxu1  ;;  %v1085_v31 = vpop.f32.mrf.mxu0 }
 0x25c   : > { %v1172_v32 = vsel %vm1162_vm3, %v866_v30, -inf  ;;  %v1181_v34 = vsel %vm1162_vm3, %v1085_v31, -inf }
 0x25d   : > { %v2258_v35 = vpop.f32.mrf.mxu1  ;;  %1173 = vmax.xlane.f32.xlu0 %v1172_v32  ;;  %1182 = vmax.xlane.f32.xlu1 %v1181_v34  ;;  %v2273_v36 = vpop.f32.mrf.mxu0 }
 0x25f   : > { %v1012_v37 = vpop.f32.mrf.mxu1 }
 0x260   : > { %v1178_v38 = vsel %vm1162_vm3, %v1012_v37, -inf }
 0x261   : > { %v2268_v39 = vpop.f32.mrf.mxu1  ;;  %1179 = vmax.xlane.f32.xlu0 %v1178_v38 }
 0x263   : > { %v1158_v40 = vpop.f32.mrf.mxu1 }
 0x264   : > { %v1184_v41 = vsel %vm1162_vm3, %v1158_v40, -inf }
 0x265   : > { %1185 = vmax.xlane.f32.xlu0 %v1184_v41  ;;  %v2278_v42 = vpop.f32.mrf.mxu1 }
 0x2da   : > { %v1165_v43 = vpop.xlane.xlu0 %1164 }
 0x2db   : > { %v1187_v44 = vsub.f32 %v647_v2, %v1165_v43 }
 0x2dd   : > { %v1195_v45 = vmul.f32 1.442695, %v1187_v44 }
 0x2de   : > { %v1168_v46 = vpop.xlane.xlu1 %1167 }
 0x2df   : > { %2429 = vpow2.f32 %v1195_v45  ;;  %v1188_v47 = vsub.f32 %v720_v22, %v1168_v46  ;;  %v1854_v45 = vld [vmem:[%s2919_s3] sm:$0xff]  ;;  %v1940_v46 = vld [vmem:[%s2921_s5 + $0x18] sm:$0xff] }
 0x2e1   : > { %v1197_v48 = vmul.f32 1.442695, %v1188_v47 }
 0x2e2   : > { %v1177_v49 = vpop.xlane.xlu1 %1176  ;;  %v1171_v50 = vpop.xlane.xlu0 %1170 }
 0x2e3   : > { %2431 = vpow2.f32 %v1197_v48  ;;  %v1191_v51 = vsub.f32 %v939_v26, %v1177_v49  ;;  %v1189_v52 = vsub.f32 %v793_v25, %v1171_v50 }
 0x2e5   : > { %v1199_v53 = vmul.f32 1.442695, %v1189_v52  ;;  %v1203_v54 = vmul.f32 1.442695, %v1191_v51 }
 0x2e6   : > { %v1174_v55 = vpop.xlane.xlu0 %1173  ;;  %v1183_v56 = vpop.xlane.xlu1 %1182 }
 0x2e7   : > { %v1190_v57 = vsub.f32 %v866_v30, %v1174_v55  ;;  %v1193_v58 = vsub.f32 %v1085_v31, %v1183_v56  ;;  %2433 = vpow2.f32 %v1199_v53 }
 0x2e8   : > { %2435 = vpow2.f32 %v1203_v54 }
 0x2e9   : > { %v1201_v59 = vmul.f32 1.442695, %v1190_v57  ;;  %v1207_v60 = vmul.f32 1.442695, %v1193_v58 }
 0x2ea   : > { %v1180_v61 = vpop.xlane.xlu0 %1179 }
 0x2eb   : > { %2437 = vpow2.f32 %v1201_v59  ;;  %v1192_v62 = vsub.f32 %v1012_v37, %v1180_v61 }
 0x2ec   : > { %v2430_v63 = vpop.eup %2429  ;;  %2439 = vpow2.f32 %v1207_v60 }
 0x2ed   : > { %v1205_v0 = vmul.f32 1.442695, %v1192_v62  ;;  %v1211_v1 = vsel %vm1162_vm3, %v2430_v63, 0.0 }
 0x2ee   : > { %v1186_v10 = vpop.xlane.xlu0 %1185  ;;  %1212 = vadd.xlane.f32.xlu1 %v1211_v1  ;;  %v1938_v1 = vld [vmem:[%s2921_s5 + $0x8] sm:$0xff] }
 0x2ef   : > { %2441 = vpow2.f32 %v1205_v0  ;;  %v1194_v11 = vsub.f32 %v1158_v40, %v1186_v10  ;;  %v1939_v0 = vld [vmem:[%s2921_s5 + $0x10] sm:$0xff]  ;;  %v1937_v10 = vld [vmem:[%s2921_s5] sm:$0xff] }
 0x2f0   : > { %v2432_v12 = vpop.eup %2431 }
 0x2f1   : > { %v1209_v13 = vmul.f32 1.442695, %v1194_v11  ;;  %v1214_v14 = vsel %vm1162_vm3, %v2432_v12, 0.0  ;;  %v2166_v11 = vld [vmem:[%s2920_s4] ss:$0 sm:$0xff] }
 0x2f2   : > { %1215 = vadd.xlane.f32.xlu0 %v1214_v14 }
 0x2f3   : > { %2443 = vpow2.f32 %v1209_v13 }
 0x2f4   : > { %v2434_v15 = vpop.eup %2433 }
 0x2f5   : > { %v1217_v16 = vsel %vm1162_vm3, %v2434_v15, 0.0  ;;  %v2436_v17 = vpop.eup %2435 }
 0x2f6   : > { %1218 = vadd.xlane.f32.xlu1 %v1217_v16  ;;  %v1223_v2 = vsel %vm1162_vm3, %v2436_v17, 0.0  ;;  %v2168_v16 = vld [vmem:[%s2922_s6] ss:$0 sm:$0xff] }
 0x2f8   : > { %v2438_v18 = vpop.eup %2437 }
 0x2f9   : > { %v1220_v19 = vsel %vm1162_vm3, %v2438_v18, 0.0  ;;  %v2787_v20 = vpop.eup %2439 }
 0x2fa   : > { %1221 = vadd.xlane.f32.xlu0 %v1220_v19  ;;  %1224 = vadd.xlane.f32.xlu1 %v1223_v2  ;;  %v1229_v23 = vsel %vm1162_vm3, %v2787_v20, 0.0 }
 0x2fc   : > { %v2789_v21 = vpop.eup %2441 }
 0x2fd   : > { %v1226_v22 = vsel %vm1162_vm3, %v2789_v21, 0.0 }
 0x2fe   : > { %1227 = vadd.xlane.f32.xlu0 %v1226_v22  ;;  %1230 = vadd.xlane.f32.xlu1 %v1229_v23 }
 0x300   : > { %v2795_v24 = vpop.eup %2443 }
 0x301   : > { %v1232_v25 = vsel %vm1162_vm3, %v2795_v24, 0.0 }
 0x302   : > { %1233 = vadd.xlane.f32.xlu0 %v1232_v25 }
 0x377   : > { %v1213_v26 = vpop.xlane.xlu1 %1212 }
 0x378   : > { %2445 = vrcp.f32 %v1213_v26 }
 0x37b   : > { %v1216_v3 = vpop.xlane.xlu0 %1215 }
 0x37c   : > { %2447 = vrcp.f32 %v1216_v3 }
 0x37f   : > { %v1219_v27 = vpop.xlane.xlu1 %1218 }
 0x380   : > { %2449 = vrcp.f32 %v1219_v27 }
 0x383   : > { %v1222_v28 = vpop.xlane.xlu0 %1221  ;;  %v1225_v29 = vpop.xlane.xlu1 %1224 }
 0x384   : > { %2451 = vrcp.f32 %v1222_v28 }
 0x385   : > { %v2446_v30 = vpop.eup %2445  ;;  %2453 = vrcp.f32 %v1225_v29 }
 0x386   : > { %v1243_v31 = vmul.f32 %v2446_v30, %v2430_v63 }
 0x387   : > { %v1228_v32 = vpop.xlane.xlu0 %1227  ;;  %v1231_v34 = vpop.xlane.xlu1 %1230 }
 0x388   : > { %2455 = vrcp.f32 %v1228_v32  ;;  %1251 = vst.msk [vmem:[%s2803_s19] sm:$0x1] %vm1162_vm3, %v1243_v31  ;;  %2282 = vmatmul.mubr.msk.f32.vlgmr.msra.gmra.mxu0 %vm1259_vm4, %v1243_v31 }
 0x389   : > { %v2448_v35 = vpop.eup %2447  ;;  %2457 = vrcp.f32 %v1231_v34  ;;  %2290 = vmatpush3.msra.mxu0 %v2671_v4  ;;  %2291 = vmatprep.mubr.msk.f32.mxu0 %vm2529_vm1, %v2528_v33 }
 0x38a   : > { %v1244_v36 = vmul.f32 %v2448_v35, %v2432_v12  ;;  %2299 = vmatprep.subr.mxu0 %v2528_v33 }
 0x38b   : > { %v1234_v37 = vpop.xlane.xlu0 %1233 }
 0x38c   : > { %2459 = vrcp.f32 %v1234_v37  ;;  %1252 = vst.msk [vmem:[%s2803_s19 + $0x1] sm:$0x1] %vm1162_vm3, %v1244_v36  ;;  %2287 = vmatmul.mubr.msk.f32.vlgmr.msra.gmra.mxu1 %vm1259_vm4, %v1244_v36 }
 0x38d   : > { %2295 = vmatpush3.msra.mxu1 %v2677_v5  ;;  %2296 = vmatprep.mubr.msk.f32.mxu1 %vm2529_vm1, %v2528_v33  ;;  %v2450_v4 = vpop.eup %2449 }
 0x38e   : > { %2304 = vmatprep.subr.mxu1 %v2528_v33  ;;  %v1245_v38 = vmul.f32 %v2450_v4, %v2434_v15 }
 0x390   : > { %1253 = vst.msk [vmem:[%s2803_s19 + $0x2] sm:$0x1] %vm1162_vm3, %v1245_v38  ;;  %2292 = vmatmul.mubr.msk.f32.vlgmr.msra.gmra.mxu0 %vm1259_vm4, %v1245_v38 }
 0x391   : > { %v2452_v39 = vpop.eup %2451  ;;  %2300 = vmatpush3.msra.mxu0 %v2679_v6  ;;  %2301 = vmatprep.mubr.msk.f32.mxu0 %vm2529_vm1, %v2528_v33 }
 0x392   : > { %v2454_v40 = vpop.eup %2453  ;;  %v1246_v5 = vmul.f32 %v2452_v39, %v2438_v18  ;;  %2309 = vmatprep.subr.mxu0 %v2528_v33 }
 0x393   : > { %v1247_v41 = vmul.f32 %v2454_v40, %v2436_v17 }
 0x394   : > { %1254 = vst.msk [vmem:[%s2803_s19 + $0x3] sm:$0x1] %vm1162_vm3, %v1246_v5  ;;  %2297 = vmatmul.mubr.msk.f32.vlgmr.msra.gmra.mxu1 %vm1259_vm4, %v1246_v5 }
 0x395   : > { %v2456_v42 = vpop.eup %2455  ;;  %1255 = vst.msk [vmem:[%s2803_s19 + $0x4] sm:$0x1] %vm1162_vm3, %v1247_v41  ;;  %2302 = vmatmul.mubr.msk.f32.vlgmr.msra.gmra.mxu0 %vm1259_vm4, %v1247_v41  ;;  %2305 = vmatpush3.msra.mxu1 %v2685_v7 }
 0x396   : > { %v2458_v6 = vpop.eup %2457  ;;  %2306 = vmatprep.mubr.msk.f32.mxu1 %vm2529_vm1, %v2528_v33  ;;  %2310 = vmatpush3.msra.mxu0 %v2687_v8  ;;  %v1248_v43 = vmul.f32 %v2456_v42, %v2789_v21 }
 0x397   : > { %2311 = vmatprep.mubr.msk.f32.mxu0 %vm2529_vm1, %v2528_v33  ;;  %v1249_v44 = vmul.f32 %v2458_v6, %v2787_v20  ;;  %2314 = vmatprep.subr.mxu1 %v2528_v33 }
 0x398   : > { %1256 = vst.msk [vmem:[%s2803_s19 + $0x5] sm:$0x1] %vm1162_vm3, %v1248_v43  ;;  %2307 = vmatmul.mubr.msk.f32.vlgmr.msra.gmra.mxu1 %vm1259_vm4, %v1248_v43  ;;  %2319 = vmatprep.subr.mxu0 %v2528_v33 }
 0x399   : > { %v2460_v7 = vpop.eup %2459  ;;  %1257 = vst.msk [vmem:[%s2803_s19 + $0x6] sm:$0x1] %vm1162_vm3, %v1249_v44  ;;  %2312 = vmatmul.mubr.msk.f32.vlgmr.msra.gmra.mxu0 %vm1259_vm4, %v1249_v44  ;;  %2315 = vmatpush3.msra.mxu1 %v2693_v9  ;;  %v1855_v9 = vld [vmem:[%s2919_s3 + $0x8] sm:$0xff] }
 0x39a   : > { %2316 = vmatprep.mubr.msk.f32.mxu1 %vm2529_vm1, %v2528_v33  ;;  %v1250_v8 = vmul.f32 %v2460_v7, %v2795_v24  ;;  %2323 = vmatprep.mubr.msk.f32.mxu0 %vm2529_vm1, %v2528_v33 }
 0x39b   : > { %2326 = vmatprep.subr.mxu1 %v2528_v33  ;;  %2320 = vmatpush3.msra.mxu0 %v1855_v9 }
 0x39c   : > { %1258 = vst.msk [vmem:[%s2803_s19 + $0x7] sm:$0x1] %vm1162_vm3, %v1250_v8  ;;  %2317 = vmatmul.mubr.msk.f32.vlgmr.msra.gmra.mxu1 %vm1259_vm4, %v1250_v8  ;;  %2321 = vmatprep.subr.mxu0 %v2528_v33 }
 0x39d   : > { %2334 = vmatprep.mubr.msk.f32.mxu1 %vm2529_vm1, %v2528_v33  ;;  %2322 = vmatpush3.msra.mxu0 %v1854_v45 }
 0x39e   : > { %2327 = vmatpush3.msra.mxu1 %v1940_v46 }
 0x39f   : > { %2328 = vmatprep.subr.mxu1 %v2528_v33 }
 0x3a0   : > { %2329 = vmatpush3.msra.mxu1 %v1939_v0 }
 0x3a1   : > { %2330 = vmatprep.subr.mxu1 %v2528_v33 }
 0x3a2   : > { %2331 = vmatpush3.msra.mxu1 %v1938_v1 }
 0x3a3   : > { %2332 = vmatprep.subr.mxu1 %v2528_v33 }
 0x3a4   : > { %2333 = vmatpush3.msra.mxu1 %v1937_v10 }
 0x448   : > { %v1329_v47 = vpop.f32.mrf.mxu0 }
 0x449   : > { %1845 = vst.msk [vmem:[#allocation2] sm:$0x1] %vm1844_vm5, %v1329_v47 }
 0x44a   : > { %v2283_v48 = vpop.f32.mrf.mxu0 }
 0x44c   : > { %v1402_v49 = vpop.f32.mrf.mxu1 }
 0x44d   : > { %1846 = vst.msk [vmem:[#allocation2 + $0x1] sm:$0x1] %vm1844_vm5, %v1402_v49 }
 0x44e   : > { %v2288_v50 = vpop.f32.mrf.mxu1 }
 0x450   : > { %v1475_v51 = vpop.f32.mrf.mxu0 }
 0x451   : > { %1847 = vst.msk [vmem:[#allocation2 + $0x2] sm:$0x1] %vm1844_vm5, %v1475_v51 }
 0x452   : > { %v2293_v52 = vpop.f32.mrf.mxu0 }
 0x454   : > { %v1548_v53 = vpop.f32.mrf.mxu1 }
 0x455   : > { %1848 = vst.msk [vmem:[#allocation2 + $0x3] sm:$0x1] %vm1844_vm5, %v1548_v53  ;;  %v1621_v54 = vpop.f32.mrf.mxu0 }
 0x456   : > { %1849 = vst.msk [vmem:[#allocation2 + $0x4] sm:$0x1] %vm1844_vm5, %v1621_v54  ;;  %v2298_v55 = vpop.f32.mrf.mxu1 }
 0x457   : > { %v2303_v56 = vpop.f32.mrf.mxu0 }
 0x458   : > { %v1694_v57 = vpop.f32.mrf.mxu1 }
 0x459   : > { %1850 = vst.msk [vmem:[#allocation2 + $0x5] sm:$0x1] %vm1844_vm5, %v1694_v57  ;;  %v1767_v58 = vpop.f32.mrf.mxu0 }
 0x45a   : > { %1851 = vst.msk [vmem:[#allocation2 + $0x6] sm:$0x1] %vm1844_vm5, %v1767_v58  ;;  %v2308_v59 = vpop.f32.mrf.mxu1 }
 0x45b   : > { %v2313_v60 = vpop.f32.mrf.mxu0 }
 0x45c   : > { %v1840_v61 = vpop.f32.mrf.mxu1 }
 0x45d   : > { %1852 = vst.msk [vmem:[#allocation2 + $0x7] sm:$0x1] %vm1844_vm5, %v1840_v61 }
 0x45e   : > { %v2318_v62 = vpop.f32.mrf.mxu1 }
 0x464   : > { %v1853_v63 = vld [vmem:[#allocation2] sm:$0xff] }
 0x465   : > { %2324 = vmatmul.mubr.msk.f32.vlgmr.msra.gmra.mxu0 %vm347_vm0, %v1853_v63 }
 0x525   : > { %v1932_v12 = vpop.f32.mrf.mxu0 }
 0x526   : > { %v1933_v13 = vadd.f32 %v2166_v11, %v1932_v12 }
 0x527   : > { %v2325_v14 = vpop.f32.mrf.mxu0 }
 0x528   : > { %v1936_v15 = vmax.f32 %v1933_v13, 0.0 }
 0x52a   : > { %2335 = vmatmul.mubr.msk.f32.vlgmr.msra.gmra.mxu1 %vm574_vm2, %v1936_v15 }
 0x5ea   : > { %v2017_v33 = vpop.f32.mrf.mxu1 }
 0x5eb   : > { %v2018_v17 = vadd.f32 %v2168_v16, %v2017_v33 }
 0x5ec   : > { %v2336_v18 = vpop.f32.mrf.mxu1 }
 0x5ed   : > { %2022 = vst.msk [vmem:[%s331_s26] sm:$0xff] %vm2021_vm6, %v2018_v17 }
 0x5ee PF: > { %p19_p1 = scmp.ge.s32.totalorder %s2598_s10, 4   ;;  %s2930_s27 = smov %s2515_s28 }
 0x5ef   : > { %s2931_s28 = smov %s2519_s29  ;;  %s2932_s29 = smov %s2608_s13 }
 0x5f0   : > { %s2933_s30 = smov %s2598_s10  ;;  %21 = sbr.rel (!%p19_p1) target bundleno = 3 (0x3), region = 100 }
 0x5f5   :  { %2057 = vsyncpa [#allocation4], 1 }
 0x5f6   :  { %2059 = vsyncpa [#allocation4 + $0x1], 1 }

</bundles_post_ra>
